<compile_context>
chip_gen: v7x
topology: tpu7x:2x2x1
jax: 0.10.0
libtpu: 0.0.40
codegen_flags: <defaults>
</compile_context>

<pallas_src>
import math
import functools

import jax
import jax.numpy as jnp
from jax.experimental import pallas as pl
from jax.experimental.pallas import tpu as pltpu


def _round_up(a, b):
    return (a + b - 1) // b * b


# ---------------------------------------------------------------------------
# Kernel
# ---------------------------------------------------------------------------
def lem_cell_kernel(xy_ref, z_ref, wcat_ref, bcat_ref, wz_ref, bz_ref, out_ref,
                    *, dt, ninp_p, nhid_p):
    # MXU operands keep their native dtype (bf16 stays bf16); accumulate in f32.
    xy = xy_ref[...]
    z = z_ref[...].astype(jnp.float32)
    y = xy[:, ninp_p:].astype(jnp.float32)           # lane-aligned slice of [x|y]

    # Fused inp2hid(x) + hid2hid(y): one (tb, K) x (K, 4*nhid_p) matmul, f32 acc.
    t = jnp.dot(xy, wcat_ref[...], preferred_element_type=jnp.float32) + bcat_ref[...]

    # chunk(4, dim=1) equivalents -- all slices land on 128-lane boundaries.
    g_dt1 = t[:, 0 * nhid_p:1 * nhid_p]              # i_dt1 + h_dt1 (+ biases)
    g_dt2 = t[:, 1 * nhid_p:2 * nhid_p]              # i_dt2 + h_dt2
    g_z   = t[:, 2 * nhid_p:3 * nhid_p]              # i_z
    g_y   = t[:, 3 * nhid_p:4 * nhid_p]              # i_y + h_y

    # Gate math in f32 (EUP transcendentals).
    ms_dt_bar = dt * jax.nn.sigmoid(g_dt1)
    ms_dt     = dt * jax.nn.sigmoid(g_dt2)

    z_new = (1.0 - ms_dt) * z + ms_dt * jnp.tanh(g_y)

    # transform_z(z_new): cast back to weight dtype so bf16 weights get a
    # native bf16 MXU pass on the critical path.
    tz = jnp.dot(z_new.astype(wz_ref.dtype), wz_ref[...],
                 preferred_element_type=jnp.float32) + bz_ref[...]
    y_new = (1.0 - ms_dt_bar) * y + ms_dt_bar * jnp.tanh(tz + g_z)

    # Packed lane-dense output: [y_new | z_new], both stores 128-lane aligned.
    out_ref[:, 0:nhid_p] = y_new.astype(out_ref.dtype)
    out_ref[:, nhid_p:2 * nhid_p] = z_new.astype(out_ref.dtype)


# ---------------------------------------------------------------------------
# Parameter packing (done once, outside the per-step call)
# ---------------------------------------------------------------------------
def pack_lem_params(params, weight_dtype=None):
    """Build the fused, lane-padded weight/bias tensors.

    params = (wi, bi, wh, bh, wz, bz) in (in_features, out_features) /
    (1, out_features) layout (i.e. transposed vs. PyTorch nn.Linear.weight).
    """
    wi, bi, wh, bh, wz, bz = params
    ninp = wi.shape[0]
    nhid = wz.shape[0]
    if weight_dtype is None:
        weight_dtype = wi.dtype

    ninp_p = _round_up(ninp, 128)
    nhid_p = _round_up(nhid, 128)
    K = ninp_p + nhid_p

    # W_cat: rows [0:ninp] <- inp2hid chunks, rows [ninp_p:ninp_p+nhid] <- hid2hid chunks.
    wcat = jnp.zeros((K, 4 * nhid_p), weight_dtype)
    for c in range(4):
        wcat = wcat.at[:ninp, c * nhid_p:c * nhid_p + nhid].set(
            wi[:, c * nhid:(c + 1) * nhid].astype(weight_dtype))
    # hid2hid chunks map to (dt1, dt2, y) i.e. column blocks (0, 1, 3); block 2 (i_z) stays 0.
    for c_src, c_dst in ((0, 0), (1, 1), (2, 3)):
        wcat = wcat.at[ninp_p:ninp_p + nhid, c_dst * nhid_p:c_dst * nhid_p + nhid].set(
            wh[:, c_src * nhid:(c_src + 1) * nhid].astype(weight_dtype))

    # Folded bias (kept f32; it is added to the f32 accumulator).
    bcat = jnp.zeros((1, 4 * nhid_p), jnp.float32)
    for c in range(4):
        bcat = bcat.at[:, c * nhid_p:c * nhid_p + nhid].add(
            bi[:, c * nhid:(c + 1) * nhid].astype(jnp.float32))
    for c_src, c_dst in ((0, 0), (1, 1), (2, 3)):
        bcat = bcat.at[:, c_dst * nhid_p:c_dst * nhid_p + nhid].add(
            bh[:, c_src * nhid:(c_src + 1) * nhid].astype(jnp.float32))

    wz_p = jnp.zeros((nhid_p, nhid_p), weight_dtype).at[:nhid, :nhid].set(
        wz.astype(weight_dtype))
    bz_p = jnp.zeros((1, nhid_p), jnp.float32).at[:, :nhid].set(
        bz.astype(jnp.float32))

    dims = (ninp, nhid, ninp_p, nhid_p)
    return (wcat, bcat, wz_p, bz_p), dims


# ---------------------------------------------------------------------------
# Wrapper
# ---------------------------------------------------------------------------
def lem_cell_stoch(x, y, z, packed_params, dims, dt, *, tile_b=256):
    wcat, bcat, wz_p, bz_p = packed_params
    ninp, nhid, ninp_p, nhid_p = dims
    B = x.shape[0]
    assert x.shape[1] == ninp and y.shape[1] == nhid and z.shape[1] == nhid

    act_dtype = x.dtype
    itemsize = jnp.dtype(act_dtype).itemsize
    sub = {4: 8, 2: 16, 1: 32}.get(itemsize, 8)      # sublane multiple per dtype

    # Batch tile: multiple of the sublane packing, <= padded batch.
    tile_b = max(sub, _round_up(min(tile_b, _round_up(B, sub)), sub))
    B_p = _round_up(B, tile_b)
    K = ninp_p + nhid_p

    # Concatenated, zero-padded [x | y] activation (bf16 stays bf16 for the MXU).
    xy = jnp.zeros((B_p, K), act_dtype)
    xy = xy.at[:B, :ninp].set(x)
    xy = xy.at[:B, ninp_p:ninp_p + nhid].set(y.astype(act_dtype))
    z_p = jnp.zeros((B_p, nhid_p), act_dtype).at[:B, :nhid].set(z.astype(act_dtype))

    # VMEM budget: weights (double-buffered by default) + double-buffered batch
    # tiles + f32 intermediates, with headroom. Floor 32 MiB, cap 64 MiB (v7x).
    w_bytes = (wcat.size * wcat.dtype.itemsize + wz_p.size * wz_p.dtype.itemsize
               + bcat.size * 4 + bz_p.size * 4)
    a_bytes = (tile_b * K + tile_b * nhid_p) * itemsize
    o_bytes = tile_b * 2 * nhid_p * jnp.dtype(y.dtype).itemsize
    i_bytes = tile_b * 8 * nhid_p * 4                 # f32 fused-matmul out + gates
    need = 2 * w_bytes + 2 * (a_bytes + o_bytes) + i_bytes
    vmem_limit = int(min(max(need * 3 // 2 + (4 << 20), 32 << 20), 64 << 20))

    kernel = functools.partial(lem_cell_kernel, dt=float(dt),
                               ninp_p=ninp_p, nhid_p=nhid_p)

    row = lambda i: (i, 0)
    rep = lambda i: (0, 0)   # weights/biases: constant block across the grid

    out = pl.pallas_call(
        kernel,
        out_shape=jax.ShapeDtypeStruct((B_p, 2 * nhid_p), y.dtype),
        grid_spec=pltpu.PrefetchScalarGridSpec(
            num_scalar_prefetch=0,
            grid=(B_p // tile_b,),
            in_specs=[
                pl.BlockSpec((tile_b, K), row),              # [x | y]
                pl.BlockSpec((tile_b, nhid_p), row),         # z
                pl.BlockSpec((K, 4 * nhid_p), rep),          # W_cat
                pl.BlockSpec((1, 4 * nhid_p), rep),          # b_cat
                pl.BlockSpec((nhid_p, nhid_p), rep),         # W_transform_z^T
                pl.BlockSpec((1, nhid_p), rep),              # b_transform_z
            ],
            out_specs=pl.BlockSpec((tile_b, 2 * nhid_p), row),
        ),
        compiler_params=pltpu.CompilerParams(
            dimension_semantics=("parallel",),               # megacore / v7x 2-TC
            vmem_limit_bytes=vmem_limit,
        ),
    )(xy, z_p, wcat, bcat, wz_p, bz_p)

    y_new = out[:B, :nhid]
    z_new = out[:B, nhid_p:nhid_p + nhid]
    return y_new, z_new


# ---------------------------------------------------------------------------
# Init + pure-JAX reference (matches the PyTorch forward)
# ---------------------------------------------------------------------------
def init_params(key, ninp, nhid, dtype=jnp.float32):
    std = 1.0 / math.sqrt(nhid)
    ks = jax.random.split(key, 6)
    u = lambda k, shape: jax.random.uniform(k, shape, dtype, minval=-std, maxval=std)
    wi = u(ks[0], (ninp, 4 * nhid))    # inp2hid.weight^T
    bi = u(ks[1], (1, 4 * nhid))       # inp2hid.bias
    wh = u(ks[2], (nhid, 3 * nhid))    # hid2hid.weight^T
    bh = u(ks[3], (1, 3 * nhid))       # hid2hid.bias
    wz = u(ks[4], (nhid, nhid))        # transform_z.weight^T
    bz = u(ks[5], (1, nhid))           # transform_z.bias
    return (wi, bi, wh, bh, wz, bz)


def lem_cell_ref(x, y, z, params, dt):
    wi, bi, wh, bh, wz, bz = params
    nhid = y.shape[1]
    ti = x @ wi + bi
    th = y @ wh + bh
    i_dt1, i_dt2, i_z, i_y = [ti[:, k * nhid:(k + 1) * nhid] for k in range(4)]
    h_dt1, h_dt2, h_y = [th[:, k * nhid:(k + 1) * nhid] for k in range(3)]
    ms_dt_bar = dt * jax.nn.sigmoid(i_dt1 + h_dt1)
    ms_dt = dt * jax.nn.sigmoid(i_dt2 + h_dt2)
    z_new = (1.0 - ms_dt) * z + ms_dt * jnp.tanh(i_y + h_y)
    y_new = (1.0 - ms_dt_bar) * y + ms_dt_bar * jnp.tanh(z_new @ wz + bz + i_z)
    return y_new, z_new


if __name__ == "__main__":
    B, ninp, nhid = 16, 16, 32
    dt = 0.1

    key = jax.random.PRNGKey(0)
    kx, ky, kz, kp = jax.random.split(key, 4)
    x = jax.random.normal(kx, (B, ninp), jnp.float32)
    y = jax.random.normal(ky, (B, nhid), jnp.float32)
    z = jax.random.normal(kz, (B, nhid), jnp.float32)
    params = init_params(kp, ninp, nhid)

    # --- f32 path (tile_b=8 -> 2 grid steps, exercises batch pipelining) ---
    packed, dims = pack_lem_params(params)
    y_out, z_out = lem_cell_stoch(x, y, z, packed, dims, dt, tile_b=8)
    jax.block_until_ready((y_out, z_out))

    y_ref, z_ref = lem_cell_ref(x, y, z, params, dt)
    assert jnp.allclose(y_out, y_ref, atol=1e-5, rtol=1e-5)
    assert jnp.allclose(z_out, z_ref, atol=1e-5, rtol=1e-5)

    # --- bf16 path: bf16 MXU operands, f32 gate math ---
    to_bf16 = lambda t: t.astype(jnp.bfloat16)
    params_bf16 = tuple(to_bf16(p) for p in params)
    x_b, y_b, z_b = to_bf16(x), to_bf16(y), to_bf16(z)
    packed_b, dims_b = pack_lem_params(params_bf16)
    y_out_b, z_out_b = lem_cell_stoch(x_b, y_b, z_b, packed_b, dims_b, dt, tile_b=16)
    jax.block_until_ready((y_out_b, z_out_b))

    # Reference on the same bf16-rounded values, computed in f32.
    f32 = lambda t: t.astype(jnp.float32)
    y_ref_b, z_ref_b = lem_cell_ref(f32(x_b), f32(y_b), f32(z_b),
                                    tuple(f32(p) for p in params_bf16), dt)
    assert jnp.allclose(f32(y_out_b), y_ref_b, atol=7e-2, rtol=7e-2)
    assert jnp.allclose(f32(z_out_b), z_ref_b, atol=7e-2, rtol=7e-2)

    print("KERNEL_OK")
</pallas_src>

<mosaic_0001>
module attributes {stable_mosaic.version = 11 : i64} {
  func.func @lem_cell_kernel(%arg0: i32, %arg1: memref<8x256xf32, #tpu.memory_space<vmem>>, %arg2: memref<8x128xf32, #tpu.memory_space<vmem>>, %arg3: memref<256x512xf32, #tpu.memory_space<vmem>>, %arg4: memref<1x512xf32, #tpu.memory_space<vmem>>, %arg5: memref<128x128xf32, #tpu.memory_space<vmem>>, %arg6: memref<1x128xf32, #tpu.memory_space<vmem>>, %arg7: memref<8x256xf32, #tpu.memory_space<vmem>>) attributes {dimension_semantics = [#tpu.dimension_semantics<parallel>], iteration_bounds = array<i64: 2>, scalar_prefetch = 0 : i64, scratch_operands = 0 : i64, tpu.core_type = #tpu.core_type<tc>, window_params = [{transform_indices = @transform_0, window_bounds = array<i64: 8, 256>}, {transform_indices = @transform_1, window_bounds = array<i64: 8, 128>}, {pipeline_mode = #tpu.pipeline_mode<synchronous>, transform_indices = @transform_2, window_bounds = array<i64: 256, 512>}, {pipeline_mode = #tpu.pipeline_mode<synchronous>, transform_indices = @transform_3, window_bounds = array<i64: 1, 512>}, {pipeline_mode = #tpu.pipeline_mode<synchronous>, transform_indices = @transform_4, window_bounds = array<i64: 128, 128>}, {pipeline_mode = #tpu.pipeline_mode<synchronous>, transform_indices = @transform_5, window_bounds = array<i64: 1, 128>}, {transform_indices = @transform_6, window_bounds = array<i64: 8, 256>}]} {
    %c0 = arith.constant 0 : index
    %c0_0 = arith.constant 0 : index
    %0 = vector.load %arg1[%c0, %c0_0] : memref<8x256xf32, #tpu.memory_space<vmem>>, vector<8x256xf32>
    %c0_1 = arith.constant 0 : index
    %c0_2 = arith.constant 0 : index
    %1 = vector.load %arg2[%c0_1, %c0_2] : memref<8x128xf32, #tpu.memory_space<vmem>>, vector<8x128xf32>
    %2 = vector.extract_strided_slice %0 {offsets = [0, 128], sizes = [8, 128], strides = [1, 1]} : vector<8x256xf32> to vector<8x128xf32>
    %c0_3 = arith.constant 0 : index
    %c0_4 = arith.constant 0 : index
    %3 = vector.load %arg3[%c0_3, %c0_4] : memref<256x512xf32, #tpu.memory_space<vmem>>, vector<256x512xf32>
    %cst = arith.constant dense<0.000000e+00> : vector<8x512xf32>
    %4 = tpu.matmul %0, %3, %cst {dimension_numbers = #tpu.dot_dimension_numbers<[1], [0], [0], [1], [0, 0, 1, 1], [], []>} : vector<8x256xf32>, vector<256x512xf32>, vector<8x512xf32> -> vector<8x512xf32>
    %c0_5 = arith.constant 0 : index
    %c0_6 = arith.constant 0 : index
    %5 = vector.load %arg4[%c0_5, %c0_6] : memref<1x512xf32, #tpu.memory_space<vmem>>, vector<1x512xf32>
    %6 = vector.broadcast %5 : vector<1x512xf32> to vector<8x512xf32>
    %7 = arith.addf %4, %6 : vector<8x512xf32>
    %8 = vector.extract_strided_slice %7 {offsets = [0, 0], sizes = [8, 128], strides = [1, 1]} : vector<8x512xf32> to vector<8x128xf32>
    %9 = vector.extract_strided_slice %7 {offsets = [0, 128], sizes = [8, 128], strides = [1, 1]} : vector<8x512xf32> to vector<8x128xf32>
    %10 = vector.extract_strided_slice %7 {offsets = [0, 256], sizes = [8, 128], strides = [1, 1]} : vector<8x512xf32> to vector<8x128xf32>
    %11 = vector.extract_strided_slice %7 {offsets = [0, 384], sizes = [8, 128], strides = [1, 1]} : vector<8x512xf32> to vector<8x128xf32>
    %12 = arith.negf %8 : vector<8x128xf32>
    %13 = math.exp %12 : vector<8x128xf32>
    %cst_7 = arith.constant 1.000000e+00 : f32
    %14 = vector.broadcast %cst_7 : f32 to vector<8x128xf32>
    %15 = arith.addf %14, %13 : vector<8x128xf32>
    %16 = arith.divf %14, %15 : vector<8x128xf32>
    %cst_8 = arith.constant 1.000000e-01 : f32
    %17 = vector.broadcast %cst_8 : f32 to vector<8x128xf32>
    %18 = arith.mulf %17, %16 : vector<8x128xf32>
    %19 = arith.negf %9 : vector<8x128xf32>
    %20 = math.exp %19 : vector<8x128xf32>
    %cst_9 = arith.constant 1.000000e+00 : f32
    %21 = vector.broadcast %cst_9 : f32 to vector<8x128xf32>
    %22 = arith.addf %21, %20 : vector<8x128xf32>
    %23 = arith.divf %21, %22 : vector<8x128xf32>
    %cst_10 = arith.constant 1.000000e-01 : f32
    %24 = vector.broadcast %cst_10 : f32 to vector<8x128xf32>
    %25 = arith.mulf %24, %23 : vector<8x128xf32>
    %cst_11 = arith.constant 1.000000e+00 : f32
    %26 = vector.broadcast %cst_11 : f32 to vector<8x128xf32>
    %27 = arith.subf %26, %25 : vector<8x128xf32>
    %28 = arith.mulf %27, %1 : vector<8x128xf32>
    %29 = math.tanh %11 : vector<8x128xf32>
    %30 = arith.mulf %25, %29 : vector<8x128xf32>
    %31 = arith.addf %28, %30 : vector<8x128xf32>
    %c0_12 = arith.constant 0 : index
    %c0_13 = arith.constant 0 : index
    %32 = vector.load %arg5[%c0_12, %c0_13] : memref<128x128xf32, #tpu.memory_space<vmem>>, vector<128x128xf32>
    %cst_14 = arith.constant dense<0.000000e+00> : vector<8x128xf32>
    %33 = tpu.matmul %31, %32, %cst_14 {dimension_numbers = #tpu.dot_dimension_numbers<[1], [0], [0], [1], [0, 0, 1, 1], [], []>} : vector<8x128xf32>, vector<128x128xf32>, vector<8x128xf32> -> vector<8x128xf32>
    %c0_15 = arith.constant 0 : index
    %c0_16 = arith.constant 0 : index
    %34 = vector.load %arg6[%c0_15, %c0_16] : memref<1x128xf32, #tpu.memory_space<vmem>>, vector<1x128xf32>
    %35 = vector.broadcast %34 : vector<1x128xf32> to vector<8x128xf32>
    %36 = arith.addf %33, %35 : vector<8x128xf32>
    %cst_17 = arith.constant 1.000000e+00 : f32
    %37 = vector.broadcast %cst_17 : f32 to vector<8x128xf32>
    %38 = arith.subf %37, %18 : vector<8x128xf32>
    %39 = arith.mulf %38, %2 : vector<8x128xf32>
    %40 = arith.addf %36, %10 : vector<8x128xf32>
    %41 = math.tanh %40 : vector<8x128xf32>
    %42 = arith.mulf %18, %41 : vector<8x128xf32>
    %43 = arith.addf %39, %42 : vector<8x128xf32>
    %c0_18 = arith.constant 0 : index
    %c0_19 = arith.constant 0 : index
    %44 = vector.load %arg7[%c0_18, %c0_19] : memref<8x256xf32, #tpu.memory_space<vmem>>, vector<8x128xf32>
    tpu.vector_store %arg7[%c0_18, %c0_19], %43 {strides = array<i32>} : memref<8x256xf32, #tpu.memory_space<vmem>>, vector<8x128xf32>,
    %c0_20 = arith.constant 0 : index
    %c128 = arith.constant 128 : index
    %45 = vector.load %arg7[%c0_20, %c128] : memref<8x256xf32, #tpu.memory_space<vmem>>, vector<8x128xf32>
    tpu.vector_store %arg7[%c0_20, %c128], %31 {strides = array<i32>} : memref<8x256xf32, #tpu.memory_space<vmem>>, vector<8x128xf32>,
    return
  }
  func.func @transform_0(%arg0: i32) -> (i32, i32) {
    %c0_i32 = arith.constant 0 : i32
    %c0_i32_0 = arith.constant 0 : i32
    return %arg0, %c0_i32 : i32, i32
  }
  func.func @transform_1(%arg0: i32) -> (i32, i32) {
    %c0_i32 = arith.constant 0 : i32
    %c0_i32_0 = arith.constant 0 : i32
    return %arg0, %c0_i32 : i32, i32
  }
  func.func @transform_2(%arg0: i32) -> (i32, i32) {
    %c0_i32 = arith.constant 0 : i32
    %c0_i32_0 = arith.constant 0 : i32
    %c0_i32_1 = arith.constant 0 : i32
    return %c0_i32, %c0_i32_0 : i32, i32
  }
  func.func @transform_3(%arg0: i32) -> (i32, i32) {
    %c0_i32 = arith.constant 0 : i32
    %c0_i32_0 = arith.constant 0 : i32
    %c0_i32_1 = arith.constant 0 : i32
    return %c0_i32, %c0_i32_0 : i32, i32
  }
  func.func @transform_4(%arg0: i32) -> (i32, i32) {
    %c0_i32 = arith.constant 0 : i32
    %c0_i32_0 = arith.constant 0 : i32
    %c0_i32_1 = arith.constant 0 : i32
    return %c0_i32, %c0_i32_0 : i32, i32
  }
  func.func @transform_5(%arg0: i32) -> (i32, i32) {
    %c0_i32 = arith.constant 0 : i32
    %c0_i32_0 = arith.constant 0 : i32
    %c0_i32_1 = arith.constant 0 : i32
    return %c0_i32, %c0_i32_0 : i32, i32
  }
  func.func @transform_6(%arg0: i32) -> (i32, i32) {
    %c0_i32 = arith.constant 0 : i32
    %c0_i32_0 = arith.constant 0 : i32
    return %arg0, %c0_i32 : i32, i32
  }
}

</mosaic_0001>

<bundles_post_ra>
// kernel: tpu_custom_call.1
= control target key start
LH: loop header
LB: loop body
LE: loop exit
PB: predicated region body
PF: predicated region fallthrough
CT: control target
= control target key end

     0   :  { %s1741_s0 = inlined_call_operand.hbm [shape: f32[16,256], index: 0, kind: input, shape index: {}]   ;;  %s1742_s1 = inlined_call_operand.hbm [shape: f32[16,128], index: 1, kind: input, shape index: {}]   ;;  %s1743_s2 = inlined_call_operand.hbm [shape: f32[256,512], index: 2, kind: input, shape index: {}]   ;;  %s1744_s3 = inlined_call_operand.vmem [shape: f32[1,512], index: 3, kind: input, shape index: {}]   ;;  %s1745_s4 = inlined_call_operand.hbm [shape: f32[128,128], index: 4, kind: input, shape index: {}]   ;;  %s1746_s5 = inlined_call_operand.vmem [shape: f32[1,128], index: 5, kind: input, shape index: {}]   ;;  %s1747_s6 = inlined_call_operand.hbm [shape: f32[16,256], index: 6, kind: output, shape index: {}]  }
   0x1   :  { %1752 = sst [smem:[#allocation16_spill]] %s1741_s0 }
   0x2   :  { %1753 = sst [smem:[#allocation17_spill]] %s1743_s2 }
   0x3   :  { %11 = vsyncpa [#allocation3], 0 }
   0x4   :  { %13 = vsyncpa [#allocation3 + $0x1], 0 }
   0x5   :  { %14 = vsyncpa [#allocation6], 0 }
   0x6   :  { %16 = vsyncpa [#allocation6 + $0x1], 0 }
   0x7   :  { %17 = vsyncpa [#allocation9], 0 }
   0x8   :  { %18 = vsyncpa [#allocation4], 0 }
   0x9   :  { %20 = vsyncpa [#allocation4 + $0x1], 0  ;;  %s1440_s21 = smov 0   ;;  %s1442_s22 = smov 0  }
   0xa   :  { %s1444_s23 = smov 0   ;;  %s1446_s24 = smov 0  }
   0xb LB: > { %s1461_s25 = sadd.s32 4294967295, %s1391_s24   ;;  %s876_s26 = sadd.s32 4294967294, %s1391_s24   ;;  %s1391_s24 = sphi %s1446_s24, %s1776_s24   ;;  %s1387_s23 = sphi %s1444_s23, %s1775_s23   ;;  %s1383_s22 = sphi %s1442_s22, %s1774_s22   ;;  %s1379_s21 = sphi %s1440_s21, %s1773_s21  }
   0xc   : > { %p46_p0 = scmp.ne.s32.totalorder %s1383_s22, %s1379_s21  ;;  %p1748_p1 = scmp.eq.s32.totalorder %s1461_s25, 0 }
   0xd   : > { %p186_p3 = scmp.eq.s32.totalorder %s876_s26, 1  ;;  %p877_p5 = scmp.ge.s32.totalorder %s1391_s24, 1 }
   0xe   : > { %p1470_p4 = por %p1748_p1, %p46_p0  ;;  %p193_p7 = scmp.lt.s32.totalorder %s1391_s24, 3 }
   0xf   : > { %p1475_p6 = por %p186_p3, %p46_p0  ;;  %s1393_s30 = smov [#allocation7]  }
  0x10   : > { %s1754_s27 = scalar_select %p1470_p4, 1, 0 }
  0x11   : > { %s1755_s28 = scalar_select %p1475_p6, 1, 0 }
  0x12   : > { %p1480_p8 = pnand %p877_p5, %p193_p7  ;;  %s205_s7 = sshll.u32 %s1393_s30, 4  ;;  %s1484_s7 = int_to_ptr.vmem [resolvable:$true] %s205_s7 }
  0x13   : > { %s1394_s9 = smov [#allocation8]   ;;  %s1758_s2 = sld [smem:[#allocation17_spill]] }
  0x14   : > { %s1756_s29 = scalar_select %p1480_p8, 1, 0 }
  0x15   : > { %p1120_p9 = pneg %p1480_p8  ;;  %s221_s10 = sshll.u32 %s1394_s9, 4  ;;  %s1495_s10 = int_to_ptr.vmem [resolvable:$true] %s221_s10 }
  0x17   : > { %p1491_p11 = pnand %p1120_p9, %p1748_p1 }
  0x19   : > { %s1197_s13 = scalar_lea.hbm %s1758_s2, 16384  ;;  %p1199_p13 = pneg %p1491_p11 }
  0x1a   : > { %p1198_p12 = scmp.ne.s32.totalorder %s1758_s2, %s1197_s13  ;;  %p1204_p5 = scmp.lt.u32.totalorder %s1197_s13, %s1758_s2 }
  0x1c   : > { %p1200_p0 = pnand %p1199_p13, %p1198_p12 }
  0x1e   : > { %p1201_p3 = pneg %p1200_p0 }
  0x20   : > { %p1206_p7 = pnand %p1204_p5, %p1201_p3 }
  0x22   : > { %1209 = shalt.err (!%p1206_p7)
}
  0x23   : > { %s1210_s18 = scalar_lea.vmem %s1484_s7, 16384  ;;  %p1218_p2 = scmp.lt.s32.totalorder %s1484_s7, %s1484_s7 }
  0x24   : > { %p1211_p9 = scmp.ne.s32.totalorder %s1484_s7, %s1210_s18  ;;  %p1219_p12 = scmp.lt.s32.totalorder %s1210_s18, %s1210_s18 }
  0x26   : > { %p1213_p10 = pnand %p1211_p9, %p1199_p13  ;;  %p1220_p0 = por %p1219_p12, %p1218_p2 }
  0x28   : > { %p1214_p1 = pneg %p1213_p10 }
  0x2a   : > { %p1221_p6 = pnand %p1220_p0, %p1214_p1 }
  0x2c   : > { %1224 = shalt.err (!%p1221_p6)
}
  0x2d   : > { %s1395_s19 = smov 512   ;;  %s1396_s20 = smov 32  }
  0x2e   : > { %1123 = dma.hbm_to_vmem [thread:$0]  (!%p1491_p11), %s1758_s2, 16384, %s1484_s7, [#allocation6], %s1395_s19, %s1395_s19, %s1396_s20  }
  0x2f   : > { %s1225_s12 = scalar_lea.hbm %s1745_s4, 2048 }
  0x30   : > { %p1226_p2 = scmp.ne.s32.totalorder %s1745_s4, %s1225_s12  ;;  %p1232_p10 = scmp.lt.u32.totalorder %s1225_s12, %s1745_s4 }
  0x32   : > { %p1228_p1 = pnand %p1226_p2, %p1199_p13 }
  0x34   : > { %p1229_p6 = pneg %p1228_p1 }
  0x36   : > { %p1234_p3 = pnand %p1232_p10, %p1229_p6 }
  0x38   : > { %1237 = shalt.err (!%p1234_p3)
}
  0x39   : > { %s1238_s7 = scalar_lea.vmem %s1495_s10, 2048  ;;  %p1246_p12 = scmp.lt.s32.totalorder %s1495_s10, %s1495_s10 }
  0x3a   : > { %p1239_p5 = scmp.ne.s32.totalorder %s1495_s10, %s1238_s7  ;;  %p1247_p0 = scmp.lt.s32.totalorder %s1238_s7, %s1238_s7 }
  0x3c   : > { %p1241_p7 = pnand %p1239_p5, %p1199_p13  ;;  %p1248_p2 = por %p1247_p0, %p1246_p12 }
  0x3e   : > { %p1242_p9 = pneg %p1241_p7 }
  0x40   : > { %p1249_p1 = pnand %p1248_p2, %p1242_p9 }
  0x42   : > { %1252 = shalt.err (!%p1249_p1)
}
  0x43   : > { %s1397_s17 = smov 128   ;;  %s1398_s18 = smov 8  }
  0x44   : > { %1126 = dma.hbm_to_vmem [thread:$0]  (!%p1491_p11), %s1745_s4, 2048, %s1495_s10, [#allocation9], %s1397_s17, %s1397_s17, %s1398_s18  }
  0x45   : > { %s1550_s26 = sadd.s32 1, %s1391_s24   ;;  %s33_s9 = sadd.s32 1, %s1387_s23 }
  0x46   : > { %s30_s30 = ssub.s32 %s1391_s24, %s1550_s26  ;;  %p40_p6 = scmp.ne.s32.totalorder %s1387_s23, %s1383_s22 }
  0x47   : > { %p31_p13 = scmp.eq.s32.totalorder %s30_s30, 0  ;;  %p41_p10 = scmp.eq.s32.totalorder %s1391_s24, 0 }
  0x48   : > { %p1759_p5 = scmp.eq.s32.totalorder %s1461_s25, 1  ;;  %p1140_p9 = scmp.lt.s32.totalorder %s1391_s24, 2 }
  0x49   : > { %s1559_s11 = scalar_select %p31_p13, %s1387_s23, %s33_s9  }
  0x4a   : > { %p42_p3 = por %p41_p10, %p40_p6  ;;  %p1563_p7 = por %p1759_p5, %p40_p6 }
  0x4b   : > { %s1569_s8 = sand.u32 1, %s1387_s23   ;;  %s900_s13 = sshll.u32 %s1391_s24, 8 }
  0x4c   : > { %s1760_s12 = scalar_select %p1563_p7, 1, 0 }
  0x4d   : > { %s881_s10 = sshll.u32 %s1569_s8, 4  ;;  %s1761_s0 = sld [smem:[#allocation16_spill]] }
  0x4e   : > { %s242_s7 = scalar_lea.vmem [#allocation2], %s881_s10  ;;  %p1580_p11 = pnand %p1140_p9, %p42_p3 }
  0x4f   : > { %s250_s17 = sshll.u32 %s242_s7, 4  ;;  %s884_s20 = sshll.u32 %s1569_s8, 3  ;;  %s1578_s17 = int_to_ptr.vmem [resolvable:$true] %s250_s17 }
  0x50   : > { %s239_s30 = scalar_lea.sflag [#allocation3], %s1569_s8  ;;  %p1255_p0 = pneg %p1580_p11 }
  0x53   : > { %s1576_s16 = scalar_lea.hbm %s1761_s0, %s900_s13  ;;  %s1258_s14 = scalar_lea.hbm %s1761_s0, 512 }
  0x54   : > { %s1253_s9 = scalar_lea.hbm %s1576_s16, 256  ;;  %p1259_p13 = scmp.lt.u32.totalorder %s1576_s16, %s1761_s0 }
  0x55   : > { %p1254_p12 = scmp.ne.s32.totalorder %s1576_s16, %s1253_s9  ;;  %p1260_p6 = scmp.lt.u32.totalorder %s1258_s14, %s1253_s9 }
  0x56   : > { %p1262_p3 = scmp.lt.u32.totalorder %s1253_s9, %s1576_s16 }
  0x57   : > { %p1256_p2 = pnand %p1255_p0, %p1254_p12  ;;  %p1261_p10 = por %p1260_p6, %p1259_p13 }
  0x59   : > { %p1257_p1 = pneg %p1256_p2  ;;  %p1263_p5 = por %p1262_p3, %p1261_p10 }
  0x5b   : > { %p1264_p9 = pnand %p1263_p5, %p1257_p1 }
  0x5d   : > { %1267 = shalt.err (!%p1264_p9)
}
  0x5e   : > { %s1268_s19 = scalar_lea.vmem %s1578_s17, 256  ;;  %s1399_s10 = smov [#allocation2]  }
  0x5f   : > { %p1269_p12 = scmp.ne.s32.totalorder %s1578_s17, %s1268_s19  ;;  %s1273_s13 = sshll.u32 %s1399_s10, 4  ;;  %s1274_s13 = int_to_ptr.vmem [resolvable:$false] %s1273_s13 }
  0x60   : > { %s1275_s15 = scalar_lea.vmem %s1274_s13, 512  ;;  %p1276_p4 = scmp.lt.s32.totalorder %s1578_s17, %s1274_s13 }
  0x61   : > { %p1271_p2 = pnand %p1269_p12, %p1255_p0  ;;  %p1277_p13 = scmp.lt.s32.totalorder %s1275_s15, %s1268_s19 }
  0x63   : > { %p1272_p7 = pneg %p1271_p2  ;;  %p1278_p6 = por %p1277_p13, %p1276_p4 }
  0x65   : > { %p1279_p10 = pnand %p1278_p6, %p1272_p7 }
  0x67   : > { %1282 = shalt.err (!%p1279_p10)
}
  0x68   : > { %1130 = dma.hbm_to_vmem [thread:$0]  (!%p1580_p11), %s1576_s16, 256, %s1578_s17, %s239_s30  }
  0x69   : > { %s885_s9 = sshll.u32 %s1391_s24, 7  ;;  %s261_s19 = scalar_lea.vmem [#allocation5], %s884_s20 }
  0x6a   : > { %s1616_s10 = scalar_lea.hbm %s1742_s1, %s885_s9  ;;  %s268_s13 = sshll.u32 %s261_s19, 4  ;;  %s269_s13 = int_to_ptr.vmem [resolvable:$true] %s268_s13 }
  0x6b   : > { %s1763_s15 = sand.u32 1, %s1391_s24   ;;  %s1283_s2 = scalar_lea.hbm %s1616_s10, 128 }
  0x6c   : > { %s258_s0 = scalar_lea.sflag [#allocation6], %s1763_s15  ;;  %p1284_p4 = scmp.ne.s32.totalorder %s1616_s10, %s1283_s2 }
  0x6d   : > { %s1288_s30 = scalar_lea.hbm %s1742_s1, 256  ;;  %p1289_p3 = scmp.lt.u32.totalorder %s1616_s10, %s1742_s1 }
  0x6e   : > { %p1286_p7 = pnand %p1284_p4, %p1255_p0  ;;  %p1290_p5 = scmp.lt.u32.totalorder %s1288_s30, %s1283_s2 }
  0x6f   : > { %p1292_p12 = scmp.lt.u32.totalorder %s1283_s2, %s1616_s10 }
  0x70   : > { %p1287_p1 = pneg %p1286_p7  ;;  %p1291_p9 = por %p1290_p5, %p1289_p3 }
  0x72   : > { %p1293_p2 = por %p1292_p12, %p1291_p9 }
  0x74   : > { %p1294_p13 = pnand %p1293_p2, %p1287_p1 }
  0x76   : > { %1297 = shalt.err (!%p1294_p13)
}
  0x77   : > { %s1298_s20 = scalar_lea.vmem %s269_s13, 128  ;;  %s1400_s14 = smov [#allocation5]  }
  0x78   : > { %p1299_p6 = scmp.ne.s32.totalorder %s269_s13, %s1298_s20  ;;  %s1303_s7 = sshll.u32 %s1400_s14, 4  ;;  %s1304_s7 = int_to_ptr.vmem [resolvable:$false] %s1303_s7 }
  0x79   : > { %s1305_s19 = scalar_lea.vmem %s1304_s7, 256  ;;  %p1306_p7 = scmp.lt.s32.totalorder %s269_s13, %s1304_s7 }
  0x7a   : > { %p1301_p10 = pnand %p1299_p6, %p1255_p0  ;;  %p1307_p8 = scmp.lt.s32.totalorder %s1305_s19, %s1298_s20 }
  0x7c   : > { %p1302_p4 = pneg %p1301_p10  ;;  %p1308_p3 = por %p1307_p8, %p1306_p7 }
  0x7e   : > { %p1309_p5 = pnand %p1308_p3, %p1302_p4 }
  0x80   : > { %1312 = shalt.err (!%p1309_p5)
}
  0x81   : > { %1133 = dma.hbm_to_vmem [thread:$0]  (!%p1580_p11), %s1616_s10, 128, %s269_s13, %s258_s0  }
  0x82   : > { %p1764_p1 = scmp.ne.s32.totalorder %s1756_s29, 0 }
  0x83   : > { %s1644_s2 = sand.u32 (!%p1764_p1), 1, %s1383_s22   ;;  %p1765_p8 = scmp.ne.s32.totalorder (!%p1764_p1), %s1754_s27, 0 }
  0x84   : > { %277 = sbr.rel (%p1764_p1) target bundleno = 712 (0x2c8), region = 44  ;;  %s887_s15 = sshll.u32 (!%p1764_p1), %s1644_s2, 4 }
  0x85   : > { %s280_s16 = scalar_lea.sflag (!%p1764_p1), [#allocation3], %s1644_s2  ;;  %s1650_s17 = scalar_lea.vmem (!%p1764_p1), [#allocation2], %s887_s15 }
  0x8b   : > { %1358 = dma.done.wait (%p1765_p8), %s280_s16, 256  }
  0x8c   : > { %1360 = vsyncadd (%p1765_p8), %s280_s16, 4294967040  ;;  %s288_s0 = sand.u32 1, %s1461_s25   ;;  %s888_s29 = sshll.u32 %s1644_s2, 3 }
  0x8d   : > { %s289_s18 = scalar_lea.sflag [#allocation6], %s288_s0  ;;  %s1658_s10 = scalar_lea.vmem [#allocation5], %s888_s29 }
  0x8e   : > { %1362 = dma.done.wait (%p1765_p8), %s289_s18, 128  }
  0x8f   : > { %1364 = vsyncadd (%p1765_p8), %s289_s18, 4294967168  ;;  %p1766_p11 = scmp.eq.s32.totalorder %s1461_s25, 0 }
  0x91   : > { %1366 = dma.done.wait (%p1766_p11), [#allocation6], 16384   ;;  %p1767_p0 = pmov %p1766_p11 }
  0x93   : > { %1368 = vsyncadd (%p1767_p0), [#allocation6], 4294950912  ;;  %p1768_p9 = pmov %p1767_p0 }
  0x94   : > { %p1769_p12 = pmov %p1767_p0 }
  0x95   : > { %1370 = dma.done.wait (%p1768_p9), [#allocation9], 2048  }
  0x96   : > { %1372 = vsyncadd (%p1769_p12), [#allocation9], 4294965248  ;;  %v338_v0 = vld [vmem:[#allocation7 + $0x8] sm:$0xff]  ;;  %v337_v2 = vld [vmem:[#allocation7] sm:$0xff]  ;;  %vm1402_vm0 = vmmov 0   ;;  %s1684_s30 = scalar_lea.vmem [#allocation10], %s887_s15 }
  0x97   : > { %v342_v1 = vld [vmem:[#allocation7 + $0x28] sm:$0xff]  ;;  %v341_v4 = vld [vmem:[#allocation7 + $0x20] sm:$0xff]  ;;  %v340_v19 = vld [vmem:[#allocation7 + $0x18] sm:$0xff]  ;;  %s901_s20 = sshll.u32 %s1461_s25, 8  ;;  %s764_s14 = sshll.u32 %s1684_s30, 4  ;;  %s1698_s14 = int_to_ptr.vmem [resolvable:$true] %s764_s14 }
  0x98   : > { %v954_v3 = vpack.c.bf16 %v342_v1, %v338_v0  ;;  %v346_v5 = vld [vmem:[#allocation7 + $0x48] sm:$0xff]  ;;  %v956_v7 = vpack.c.bf16 %v341_v4, %v337_v2  ;;  %v345_v9 = vld [vmem:[#allocation7 + $0x40] sm:$0xff]  ;;  %v344_v20 = vld [vmem:[#allocation7 + $0x38] sm:$0xff]  ;;  %s1696_s15 = scalar_lea.hbm %s1747_s6, %s901_s20  ;;  %s750_s16 = scalar_lea.sflag [#allocation4], %s1644_s2 }
  0x99   : > { %v350_v6 = vld [vmem:[#allocation7 + $0x68] sm:$0xff]  ;;  %v349_v10 = vld [vmem:[#allocation7 + $0x60] sm:$0xff]  ;;  %v339_v21 = vld [vmem:[#allocation7 + $0x10] sm:$0xff]  ;;  %v1018_v26 = vpack.c.bf16 %v344_v20, %v340_v19  ;;  %p1770_p13 = scmp.ne.s32.totalorder %s1760_s12, 0  ;;  %s1404_s25 = smov [#allocation10]  }
  0x9a   : > { %v958_v8 = vpack.c.bf16 %v350_v6, %v346_v5  ;;  %v354_v11 = vld [vmem:[#allocation7 + $0x88] sm:$0xff]  ;;  %955 = vmatprep.subr.bf16.mxu0 %v954_v3  ;;  %v960_v13 = vpack.c.bf16 %v349_v10, %v345_v9  ;;  %v353_v15 = vld [vmem:[#allocation7 + $0x80] sm:$0xff]  ;;  %v343_v22 = vld [vmem:[#allocation7 + $0x30] sm:$0xff]  ;;  %s1317_s0 = sshll.u32 %s1404_s25, 4  ;;  %s1318_s0 = int_to_ptr.vmem [resolvable:$false] %s1317_s0 }
  0x9b   : > { %v358_v12 = vld [vmem:[#allocation7 + $0xa8] sm:$0xff]  ;;  %957 = vmatpush1.bf16.msra.mxu0 %v956_v7  ;;  %v357_v16 = vld [vmem:[#allocation7 + $0xa0] sm:$0xff]  ;;  %v1020_v27 = vpack.c.bf16 %v343_v22, %v339_v21  ;;  %v348_v30 = vld [vmem:[#allocation7 + $0x58] sm:$0xff]  ;;  %1019 = vmatprep.subr.bf16.mxu1 %v1018_v26  ;;  %s1319_s29 = scalar_lea.vmem %s1318_s0, 512  ;;  %p1320_p4 = scmp.lt.s32.totalorder %s1698_s14, %s1318_s0 }
  0x9c   : > { %959 = vmatprep.subr.bf16.mxu0 %v958_v8  ;;  %v962_v14 = vpack.c.bf16 %v358_v12, %v354_v11  ;;  %v362_v17 = vld [vmem:[#allocation7 + $0xc8] sm:$0xff]  ;;  %v964_v23 = vpack.c.bf16 %v357_v16, %v353_v15  ;;  %v361_v24 = vld [vmem:[#allocation7 + $0xc0] sm:$0xff]  ;;  %v352_v31 = vld [vmem:[#allocation7 + $0x78] sm:$0xff] }
  0x9d   : > { %v366_v18 = vld [vmem:[#allocation7 + $0xe8] sm:$0xff]  ;;  %v365_v25 = vld [vmem:[#allocation7 + $0xe0] sm:$0xff]  ;;  %v1022_v33 = vpack.c.bf16 %v352_v31, %v348_v30  ;;  %v347_v34 = vld [vmem:[#allocation7 + $0x50] sm:$0xff]  ;;  %1021 = vmatpush1.bf16.msra.mxu1 %v1020_v27 }
  0x9e   : > { %v966_v28 = vpack.c.bf16 %v366_v18, %v362_v17  ;;  %v370_v29 = vld [vmem:[#allocation7 + $0x108] sm:$0xff]  ;;  %v351_v35 = vld [vmem:[#allocation7 + $0x70] sm:$0xff]  ;;  %v968_v37 = vpack.c.bf16 %v365_v25, %v361_v24  ;;  %v356_v38 = vld [vmem:[#allocation7 + $0x98] sm:$0xff] }
  0x9f   : > { %961 = vmatpush1.bf16.msra.mxu0 %v960_v13  ;;  %v374_v32 = vld [vmem:[#allocation7 + $0x128] sm:$0xff]  ;;  %v1024_v36 = vpack.c.bf16 %v351_v35, %v347_v34  ;;  %1023 = vmatprep.subr.bf16.mxu1 %v1022_v33  ;;  %v360_v39 = vld [vmem:[#allocation7 + $0xb8] sm:$0xff]  ;;  %v355_v40 = vld [vmem:[#allocation7 + $0x90] sm:$0xff] }
  0xa0   : > { %963 = vmatprep.subr.bf16.mxu0 %v962_v14  ;;  %v970_v41 = vpack.c.bf16 %v374_v32, %v370_v29  ;;  %v369_v42 = vld [vmem:[#allocation7 + $0x100] sm:$0xff]  ;;  %v1026_v44 = vpack.c.bf16 %v360_v39, %v356_v38  ;;  %v359_v45 = vld [vmem:[#allocation7 + $0xb0] sm:$0xff]  ;;  %v378_v46 = vld [vmem:[#allocation7 + $0x148] sm:$0xff] }
  0xa1   : > { %v373_v43 = vld [vmem:[#allocation7 + $0x120] sm:$0xff]  ;;  %v382_v47 = vld [vmem:[#allocation7 + $0x168] sm:$0xff]  ;;  %v364_v48 = vld [vmem:[#allocation7 + $0xd8] sm:$0xff]  ;;  %1025 = vmatpush1.bf16.msra.mxu1 %v1024_v36  ;;  %v1028_v49 = vpack.c.bf16 %v359_v45, %v355_v40 }
  0xa2   : > { %v368_v50 = vld [vmem:[#allocation7 + $0xf8] sm:$0xff]  ;;  %v972_v51 = vpack.c.bf16 %v373_v43, %v369_v42  ;;  %v377_v52 = vld [vmem:[#allocation7 + $0x140] sm:$0xff]  ;;  %1027 = vmatprep.subr.bf16.mxu1 %v1026_v44  ;;  %v363_v54 = vld [vmem:[#allocation7 + $0xd0] sm:$0xff]  ;;  %v974_v56 = vpack.c.bf16 %v382_v47, %v378_v46 }
  0xa3   : > { %965 = vmatpush1.bf16.msra.mxu0 %v964_v23  ;;  %v1030_v53 = vpack.c.bf16 %v368_v50, %v364_v48  ;;  %v367_v55 = vld [vmem:[#allocation7 + $0xf0] sm:$0xff]  ;;  %v381_v57 = vld [vmem:[#allocation7 + $0x160] sm:$0xff]  ;;  %v372_v58 = vld [vmem:[#allocation7 + $0x118] sm:$0xff] }
  0xa4   : > { %967 = vmatprep.subr.bf16.mxu0 %v966_v28  ;;  %v376_v59 = vld [vmem:[#allocation7 + $0x138] sm:$0xff]  ;;  %v386_v60 = vld [vmem:[#allocation7 + $0x188] sm:$0xff]  ;;  %v1032_v62 = vpack.c.bf16 %v367_v55, %v363_v54  ;;  %v976_v63 = vpack.c.bf16 %v381_v57, %v377_v52  ;;  %v385_v0 = vld [vmem:[#allocation7 + $0x180] sm:$0xff] }
  0xa5   : > { %v390_v61 = vld [vmem:[#allocation7 + $0x1a8] sm:$0xff]  ;;  %1029 = vmatpush1.bf16.msra.mxu1 %v1028_v49  ;;  %v1034_v1 = vpack.c.bf16 %v376_v59, %v372_v58  ;;  %v371_v2 = vld [vmem:[#allocation7 + $0x110] sm:$0xff]  ;;  %v389_v5 = vld [vmem:[#allocation7 + $0x1a0] sm:$0xff] }
  0xa6   : > { %1031 = vmatprep.subr.bf16.mxu1 %v1030_v53  ;;  %v375_v3 = vld [vmem:[#allocation7 + $0x130] sm:$0xff]  ;;  %v978_v4 = vpack.c.bf16 %v390_v61, %v386_v60  ;;  %v380_v6 = vld [vmem:[#allocation7 + $0x158] sm:$0xff]  ;;  %v394_v8 = vld [vmem:[#allocation7 + $0x1c8] sm:$0xff]  ;;  %v980_v11 = vpack.c.bf16 %v389_v5, %v385_v0 }
  0xa7   : > { %969 = vmatpush1.bf16.msra.mxu0 %v968_v37  ;;  %v384_v7 = vld [vmem:[#allocation7 + $0x178] sm:$0xff]  ;;  %v398_v9 = vld [vmem:[#allocation7 + $0x1e8] sm:$0xff]  ;;  %v1036_v10 = vpack.c.bf16 %v375_v3, %v371_v2  ;;  %v393_v12 = vld [vmem:[#allocation7 + $0x1c0] sm:$0xff] }
  0xa8   : > { %971 = vmatprep.subr.bf16.mxu0 %v970_v41  ;;  %v1038_v13 = vpack.c.bf16 %v384_v7, %v380_v6  ;;  %v379_v14 = vld [vmem:[#allocation7 + $0x150] sm:$0xff]  ;;  %v982_v16 = vpack.c.bf16 %v398_v9, %v394_v8  ;;  %v397_v17 = vld [vmem:[#allocation7 + $0x1e0] sm:$0xff]  ;;  %v388_v18 = vld [vmem:[#allocation7 + $0x198] sm:$0xff] }
  0xa9   : > { %1033 = vmatpush1.bf16.msra.mxu1 %v1032_v62  ;;  %v383_v15 = vld [vmem:[#allocation7 + $0x170] sm:$0xff]  ;;  %v392_v19 = vld [vmem:[#allocation7 + $0x1b8] sm:$0xff]  ;;  %v402_v20 = vld [vmem:[#allocation7 + $0x208] sm:$0xff]  ;;  %v984_v23 = vpack.c.bf16 %v397_v17, %v393_v12 }
  0xaa   : > { %1035 = vmatprep.subr.bf16.mxu1 %v1034_v1  ;;  %v406_v21 = vld [vmem:[#allocation7 + $0x228] sm:$0xff]  ;;  %v1040_v22 = vpack.c.bf16 %v383_v15, %v379_v14  ;;  %v401_v24 = vld [vmem:[#allocation7 + $0x200] sm:$0xff]  ;;  %v1042_v25 = vpack.c.bf16 %v392_v19, %v388_v18  ;;  %v387_v26 = vld [vmem:[#allocation7 + $0x190] sm:$0xff] }
  0xab   : > { %973 = vmatpush1.bf16.msra.mxu0 %v972_v51  ;;  %v391_v27 = vld [vmem:[#allocation7 + $0x1b0] sm:$0xff]  ;;  %v986_v28 = vpack.c.bf16 %v406_v21, %v402_v20  ;;  %v405_v29 = vld [vmem:[#allocation7 + $0x220] sm:$0xff]  ;;  %v396_v30 = vld [vmem:[#allocation7 + $0x1d8] sm:$0xff] }
  0xac   : > { %975 = vmatprep.subr.bf16.mxu0 %v974_v56  ;;  %v400_v31 = vld [vmem:[#allocation7 + $0x1f8] sm:$0xff]  ;;  %v410_v32 = vld [vmem:[#allocation7 + $0x248] sm:$0xff]  ;;  %v1044_v34 = vpack.c.bf16 %v391_v27, %v387_v26  ;;  %v988_v35 = vpack.c.bf16 %v405_v29, %v401_v24  ;;  %v409_v36 = vld [vmem:[#allocation7 + $0x240] sm:$0xff] }
  0xad   : > { %1037 = vmatpush1.bf16.msra.mxu1 %v1036_v10  ;;  %v414_v33 = vld [vmem:[#allocation7 + $0x268] sm:$0xff]  ;;  %v1046_v37 = vpack.c.bf16 %v400_v31, %v396_v30  ;;  %v395_v38 = vld [vmem:[#allocation7 + $0x1d0] sm:$0xff]  ;;  %v413_v41 = vld [vmem:[#allocation7 + $0x260] sm:$0xff] }
  0xae   : > { %1039 = vmatprep.subr.bf16.mxu1 %v1038_v13  ;;  %v399_v39 = vld [vmem:[#allocation7 + $0x1f0] sm:$0xff]  ;;  %v990_v40 = vpack.c.bf16 %v414_v33, %v410_v32  ;;  %v404_v42 = vld [vmem:[#allocation7 + $0x218] sm:$0xff]  ;;  %v418_v44 = vld [vmem:[#allocation7 + $0x288] sm:$0xff]  ;;  %v992_v48 = vpack.c.bf16 %v413_v41, %v409_v36 }
  0xaf   : > { %977 = vmatpush1.bf16.msra.mxu0 %v976_v63  ;;  %v408_v43 = vld [vmem:[#allocation7 + $0x238] sm:$0xff]  ;;  %v422_v45 = vld [vmem:[#allocation7 + $0x2a8] sm:$0xff]  ;;  %v417_v46 = vld [vmem:[#allocation7 + $0x280] sm:$0xff]  ;;  %v1048_v47 = vpack.c.bf16 %v399_v39, %v395_v38 }
  0xb0   : > { %979 = vmatprep.subr.bf16.mxu0 %v978_v4  ;;  %v421_v49 = vld [vmem:[#allocation7 + $0x2a0] sm:$0xff]  ;;  %v1050_v50 = vpack.c.bf16 %v408_v43, %v404_v42  ;;  %v403_v51 = vld [vmem:[#allocation7 + $0x210] sm:$0xff]  ;;  %v994_v53 = vpack.c.bf16 %v422_v45, %v418_v44  ;;  %v412_v54 = vld [vmem:[#allocation7 + $0x258] sm:$0xff] }
  0xb1   : > { %1041 = vmatpush1.bf16.msra.mxu1 %v1040_v22  ;;  %v407_v52 = vld [vmem:[#allocation7 + $0x230] sm:$0xff]  ;;  %v416_v55 = vld [vmem:[#allocation7 + $0x278] sm:$0xff]  ;;  %v426_v57 = vld [vmem:[#allocation7 + $0x2c8] sm:$0xff]  ;;  %v996_v60 = vpack.c.bf16 %v421_v49, %v417_v46 }
  0xb2   : > { %1043 = vmatprep.subr.bf16.mxu1 %v1042_v25  ;;  %v1673_v56 = vld [vmem:[%s1650_s17 + $0x8] sm:$0xff]  ;;  %v1052_v59 = vpack.c.bf16 %v407_v52, %v403_v51  ;;  %v425_v61 = vld [vmem:[#allocation7 + $0x2c0] sm:$0xff]  ;;  %v1054_v62 = vpack.c.bf16 %v416_v55, %v412_v54  ;;  %v411_v63 = vld [vmem:[#allocation7 + $0x250] sm:$0xff] }
  0xb3   : > { %981 = vmatpush1.bf16.msra.mxu0 %v980_v11  ;;  %v430_v58 = vld [vmem:[#allocation7 + $0x2e8] sm:$0xff]  ;;  %551 = vmatprep.mubr.f32.mxu0 %v1673_v56  ;;  %v415_v0 = vld [vmem:[#allocation7 + $0x270] sm:$0xff]  ;;  %v429_v2 = vld [vmem:[#allocation7 + $0x2e0] sm:$0xff] }
  0xb4   : > { %983 = vmatprep.subr.bf16.mxu0 %v982_v16  ;;  %622 = vmatprep.mubr.f32.mxu1 %v1673_v56  ;;  %v998_v1 = vpack.c.bf16 %v430_v58, %v426_v57  ;;  %v420_v3 = vld [vmem:[#allocation7 + $0x298] sm:$0xff]  ;;  %v434_v5 = vld [vmem:[#allocation7 + $0x308] sm:$0xff]  ;;  %v1056_v7 = vpack.c.bf16 %v415_v0, %v411_v63  ;;  %v1000_v8 = vpack.c.bf16 %v429_v2, %v425_v61  ;;  %v433_v9 = vld [vmem:[#allocation7 + $0x300] sm:$0xff] }
  0xb5   : > { %1045 = vmatpush1.bf16.msra.mxu1 %v1044_v34  ;;  %v424_v4 = vld [vmem:[#allocation7 + $0x2b8] sm:$0xff]  ;;  %v438_v6 = vld [vmem:[#allocation7 + $0x328] sm:$0xff]  ;;  %v419_v11 = vld [vmem:[#allocation7 + $0x290] sm:$0xff] }
  0xb6   : > { %1047 = vmatprep.subr.bf16.mxu1 %v1046_v37  ;;  %v1058_v10 = vpack.c.bf16 %v424_v4, %v420_v3  ;;  %v423_v12 = vld [vmem:[#allocation7 + $0x2b0] sm:$0xff]  ;;  %v1002_v13 = vpack.c.bf16 %v438_v6, %v434_v5  ;;  %v437_v14 = vld [vmem:[#allocation7 + $0x320] sm:$0xff]  ;;  %v428_v15 = vld [vmem:[#allocation7 + $0x2d8] sm:$0xff]  ;;  %v1401_v6 = vmov 0.0|0.0  }
  0xb7   : > { %985 = vmatpush1.bf16.msra.mxu0 %v984_v23  ;;  %v432_v16 = vld [vmem:[#allocation7 + $0x2f8] sm:$0xff]  ;;  %v442_v17 = vld [vmem:[#allocation7 + $0x348] sm:$0xff]  ;;  %v1060_v19 = vpack.c.bf16 %v423_v12, %v419_v11  ;;  %v1004_v20 = vpack.c.bf16 %v437_v14, %v433_v9  ;;  %v441_v21 = vld [vmem:[#allocation7 + $0x340] sm:$0xff] }
  0xb8   : > { %987 = vmatprep.subr.bf16.mxu0 %v986_v28  ;;  %v446_v18 = vld [vmem:[#allocation7 + $0x368] sm:$0xff]  ;;  %v1062_v22 = vpack.c.bf16 %v432_v16, %v428_v15  ;;  %v427_v23 = vld [vmem:[#allocation7 + $0x2d0] sm:$0xff]  ;;  %v445_v26 = vld [vmem:[#allocation7 + $0x360] sm:$0xff] }
  0xb9   : > { %1049 = vmatpush1.bf16.msra.mxu1 %v1048_v47  ;;  %v431_v24 = vld [vmem:[#allocation7 + $0x2f0] sm:$0xff]  ;;  %v1006_v25 = vpack.c.bf16 %v446_v18, %v442_v17  ;;  %v436_v27 = vld [vmem:[#allocation7 + $0x318] sm:$0xff]  ;;  %v450_v29 = vld [vmem:[#allocation7 + $0x388] sm:$0xff]  ;;  %v1008_v32 = vpack.c.bf16 %v445_v26, %v441_v21 }
  0xba   : > { %1051 = vmatprep.subr.bf16.mxu1 %v1050_v50  ;;  %v440_v28 = vld [vmem:[#allocation7 + $0x338] sm:$0xff]  ;;  %v454_v30 = vld [vmem:[#allocation7 + $0x3a8] sm:$0xff]  ;;  %v1064_v31 = vpack.c.bf16 %v431_v24, %v427_v23  ;;  %v449_v33 = vld [vmem:[#allocation7 + $0x380] sm:$0xff] }
  0xbb   : > { %989 = vmatpush1.bf16.msra.mxu0 %v988_v35  ;;  %v1066_v34 = vpack.c.bf16 %v440_v28, %v436_v27  ;;  %v435_v35 = vld [vmem:[#allocation7 + $0x310] sm:$0xff]  ;;  %v1010_v37 = vpack.c.bf16 %v454_v30, %v450_v29  ;;  %v453_v38 = vld [vmem:[#allocation7 + $0x3a0] sm:$0xff]  ;;  %v444_v39 = vld [vmem:[#allocation7 + $0x358] sm:$0xff]  ;;  %v1403_v28 = vmov 0.0   ;;  %v467_v29 = vlaneseq }
  0xbc   : > { %991 = vmatprep.subr.bf16.mxu0 %v990_v40  ;;  %v439_v36 = vld [vmem:[#allocation7 + $0x330] sm:$0xff]  ;;  %v448_v40 = vld [vmem:[#allocation7 + $0x378] sm:$0xff]  ;;  %v458_v41 = vld [vmem:[#allocation7 + $0x3c8] sm:$0xff]  ;;  %v1012_v44 = vpack.c.bf16 %v453_v38, %v449_v33 }
  0xbd   : > { %1053 = vmatpush1.bf16.msra.mxu1 %v1052_v59  ;;  %v462_v42 = vld [vmem:[#allocation7 + $0x3e8] sm:$0xff]  ;;  %v1068_v43 = vpack.c.bf16 %v439_v36, %v435_v35  ;;  %v457_v45 = vld [vmem:[#allocation7 + $0x3c0] sm:$0xff]  ;;  %v1070_v46 = vpack.c.bf16 %v448_v40, %v444_v39  ;;  %v443_v47 = vld [vmem:[#allocation7 + $0x350] sm:$0xff]  ;;  %v468_v30 = vshrl.u32 %v467_v29, 7 }
  0xbe   : > { %1055 = vmatprep.subr.bf16.mxu1 %v1054_v62  ;;  %v1014_v49 = vpack.c.bf16 %v462_v42, %v458_v41  ;;  %v461_v50 = vld [vmem:[#allocation7 + $0x3e0] sm:$0xff]  ;;  %v452_v51 = vld [vmem:[#allocation7 + $0x398] sm:$0xff]  ;;  %v451_v57 = vld [vmem:[#allocation7 + $0x390] sm:$0xff] }
  0xbf   : > { %993 = vmatpush1.bf16.msra.mxu0 %v992_v48  ;;  %v447_v48 = vld [vmem:[#allocation7 + $0x370] sm:$0xff]  ;;  %v456_v52 = vld [vmem:[#allocation7 + $0x3b8] sm:$0xff]  ;;  %v1016_v54 = vpack.c.bf16 %v461_v50, %v457_v45  ;;  %v648_v3 = vld [vmem:[#allocation8] sm:$0xff]  ;;  %v481_v38 = vsub.s32 3, %v468_v30 }
  0xc0   : > { %995 = vmatprep.subr.bf16.mxu0 %v994_v53  ;;  %v1072_v53 = vpack.c.bf16 %v447_v48, %v443_v47  ;;  %v1074_v55 = vpack.c.bf16 %v456_v52, %v452_v51  ;;  %v455_v58 = vld [vmem:[#allocation7 + $0x3b0] sm:$0xff]  ;;  %v460_v59 = vld [vmem:[#allocation7 + $0x3d8] sm:$0xff]  ;;  %v649_v4 = vld [vmem:[#allocation8 + $0x8] sm:$0xff] }
  0xc1   : > { %1057 = vmatpush1.bf16.msra.mxu1 %v1056_v7  ;;  %v1076_v61 = vpack.c.bf16 %v455_v58, %v451_v57  ;;  %v334_v62 = vld [vmem:[%s1650_s17] sm:$0xff]  ;;  %v1083_v5 = vpack.c.bf16 %v649_v4, %v648_v3  ;;  %v653_v11 = vld [vmem:[#allocation8 + $0x28] sm:$0xff]  ;;  %v655_v14 = vld [vmem:[#allocation8 + $0x38] sm:$0xff]  ;;  %s1313_s17 = scalar_lea.vmem %s1698_s14, 256 }
  0xc2   : > { %1059 = vmatprep.subr.bf16.mxu1 %v1058_v10  ;;  %v459_v0 = vld [vmem:[#allocation7 + $0x3d0] sm:$0xff]  ;;  %v652_v10 = vld [vmem:[#allocation8 + $0x20] sm:$0xff]  ;;  %v657_v17 = vld [vmem:[#allocation8 + $0x48] sm:$0xff]  ;;  %p1314_p2 = scmp.ne.s32.totalorder %s1698_s14, %s1313_s17  ;;  %p1321_p7 = scmp.lt.s32.totalorder %s1319_s29, %s1313_s17 }
  0xc3   : > { %997 = vmatpush1.bf16.msra.mxu0 %v996_v60  ;;  %v464_v60 = vld [vmem:[#allocation7 + $0x3f8] sm:$0xff]  ;;  %v650_v7 = vld [vmem:[#allocation8 + $0x10] sm:$0xff]  ;;  %v1089_v12 = vpack.c.bf16 %v653_v11, %v652_v10  ;;  %v656_v16 = vld [vmem:[#allocation8 + $0x40] sm:$0xff] }
  0xc4   : > { %999 = vmatprep.subr.bf16.mxu0 %v998_v1  ;;  %v1078_v63 = vpack.c.bf16 %v464_v60, %v460_v59  ;;  %v463_v1 = vld [vmem:[#allocation7 + $0x3f0] sm:$0xff]  ;;  %v1095_v18 = vpack.c.bf16 %v657_v17, %v656_v16  ;;  %v661_v23 = vld [vmem:[#allocation8 + $0x68] sm:$0xff]  ;;  %v663_v26 = vld [vmem:[#allocation8 + $0x78] sm:$0xff]  ;;  %v477_v60 = vsub.s32 2, %v468_v30  ;;  %p1315_p6 = pnand %p1314_p2, %p1770_p13  ;;  %p1322_p3 = por %p1321_p7, %p1320_p4 }
  0xc5   : > { %1061 = vmatpush1.bf16.msra.mxu1 %v1060_v19  ;;  %v1080_v2 = vpack.c.bf16 %v463_v1, %v459_v0  ;;  %v658_v19 = vld [vmem:[#allocation8 + $0x50] sm:$0xff] }
  0xc6   : > { %1063 = vmatprep.subr.bf16.mxu1 %v1062_v22  ;;  %v660_v22 = vld [vmem:[#allocation8 + $0x60] sm:$0xff]  ;;  %v336_v48 = vld [vmem:[%s1658_s10] sm:$0xff]  ;;  %p1316_p10 = pneg %p1315_p6 }
  0xc7   : > { %1001 = vmatpush1.bf16.msra.mxu0 %v1000_v8  ;;  %v651_v8 = vld [vmem:[#allocation8 + $0x18] sm:$0xff]  ;;  %v1101_v24 = vpack.c.bf16 %v661_v23, %v660_v22 }
  0xc8   : > { %1003 = vmatprep.subr.bf16.mxu0 %v1002_v13  ;;  %v1086_v9 = vpack.c.bf16 %v651_v8, %v650_v7  ;;  %v654_v13 = vld [vmem:[#allocation8 + $0x30] sm:$0xff]  ;;  %p1323_p5 = pnand %p1322_p3, %p1316_p10 }
  0xc9   : > { %1065 = vmatpush1.bf16.msra.mxu1 %v1064_v31  ;;  %v1092_v15 = vpack.c.bf16 %v655_v14, %v654_v13  ;;  %v473_v31 = vsub.s32 1, %v468_v30 }
  0xca   : > { %1067 = vmatprep.subr.bf16.mxu1 %v1066_v34 }
  0xcb   : > { %1005 = vmatpush1.bf16.msra.mxu0 %v1004_v20  ;;  %v659_v20 = vld [vmem:[#allocation8 + $0x58] sm:$0xff] }
  0xcc   : > { %1007 = vmatprep.subr.bf16.mxu0 %v1006_v25  ;;  %v1098_v21 = vpack.c.bf16 %v659_v20, %v658_v19  ;;  %v662_v25 = vld [vmem:[#allocation8 + $0x70] sm:$0xff] }
  0xcd   : > { %1069 = vmatpush1.bf16.msra.mxu1 %v1068_v43  ;;  %v1104_v27 = vpack.c.bf16 %v663_v26, %v662_v25 }
  0xce   : > { %1071 = vmatprep.subr.bf16.mxu1 %v1070_v46 }
  0xcf   : > { %1009 = vmatpush1.bf16.msra.mxu0 %v1008_v32  ;;  %v465_v32 = vld [vmem:[%s1744_s3] sm:$0xf] }
  0xd0   : > { %1011 = vmatprep.subr.bf16.mxu0 %v1010_v37  ;;  %v474_v33 = vrot.slane %v465_v32, %v473_v31  ;;  %v482_v41 = vrot.slane %v465_v32, %v481_v38 }
  0xd1   : > { %1073 = vmatpush1.bf16.msra.mxu1 %v1072_v53  ;;  %v469_v53 = vsub.s32 0, %v468_v30 }
  0xd2   : > { %1075 = vmatprep.subr.bf16.mxu1 %v1074_v55 }
  0xd3   : > { %1013 = vmatpush1.bf16.msra.mxu0 %v1012_v44 }
  0xd4   : > { %1015 = vmatprep.subr.bf16.mxu0 %v1014_v49 }
  0xd5   : > { %1077 = vmatpush1.bf16.msra.mxu1 %v1076_v61  ;;  %v478_v61 = vrot.slane %v465_v32, %v477_v60 }
  0xd6   : > { %1079 = vmatprep.subr.bf16.mxu1 %v1078_v63 }
  0xd7   : > { %1017 = vmatpush1.bf16.msra.mxu0 %v1016_v54  ;;  %v470_v54 = vrot.slane %v465_v32, %v469_v53 }
  0xd8   : > { %1082 = vmatprep.subr.bf16.mxu0 %v1401_v6 }
  0xd9   : > { %1081 = vmatpush1.bf16.msra.mxu1 %v1080_v2 }
  0xda   : > { %552 = vmatmul.mubr.f32.vlgmr.msra.gmra.mrb[0].mxu0 %v334_v62 }
  0xdb   : > { %1084 = vmatpush3.bf16.msra.mxu0 %v1083_v5  ;;  %951 = vmatprep.mubr.msk.f32.mxu0 %vm1402_vm0, %v1403_v28 }
  0xdc   : > { %623 = vmatmul.mubr.f32.vlgmr.msra.gmra.mrb[0].mxu1 %v334_v62  ;;  %1085 = vmatprep.subr.bf16.mxu0 %v1401_v6  ;;  %v894_v62 = vld [vmem:[%s1746_s5] ss:$0 sm:$0xff] }
  0xdf   : > { %1087 = vmatpush3.bf16.msra.mxu0 %v1086_v9 }
  0xe0   : > { %1088 = vmatprep.subr.bf16.mxu0 %v1401_v6 }
  0xe3   : > { %1090 = vmatpush3.bf16.msra.mxu0 %v1089_v12 }
  0xe4   : > { %1091 = vmatprep.subr.bf16.mxu0 %v1401_v6 }
  0xe7   : > { %1093 = vmatpush3.bf16.msra.mxu0 %v1092_v15 }
  0xe8   : > { %1094 = vmatprep.subr.bf16.mxu0 %v1401_v6 }
  0xeb   : > { %1096 = vmatpush3.bf16.msra.mxu0 %v1095_v18 }
  0xec   : > { %1097 = vmatprep.subr.bf16.mxu0 %v1401_v6 }
  0xef   : > { %1099 = vmatpush3.bf16.msra.mxu0 %v1098_v21 }
  0xf0   : > { %1100 = vmatprep.subr.bf16.mxu0 %v1401_v6 }
  0xf3   : > { %1102 = vmatpush3.bf16.msra.mxu0 %v1101_v24 }
  0xf4   : > { %1103 = vmatprep.subr.bf16.mxu0 %v1401_v6 }
  0xf7   : > { %1105 = vmatpush3.bf16.msra.mxu0 %v1104_v27 }
 0x1ad   : > { %v553_v34 = vpop.f32.mrb[0].mxu0 }
 0x1ae   : > { %v555_v35 = vpop.f32.mrb[1].mxu0  ;;  %v554_v55 = vadd.f32 %v553_v34, %v470_v54 }
 0x1af   : > { %v556_v36 = vadd.f32 %v555_v35, %v474_v33  ;;  %v624_v39 = vpop.f32.mrb[0].mxu1 }
 0x1b0   : > { %v626_v40 = vpop.f32.mrb[1].mxu1  ;;  %v892_v57 = vmul.f32 -1.442695, %v554_v55  ;;  %v625_v0 = vadd.f32 %v624_v39, %v478_v61 }
 0x1b1   : > { %v893_v37 = vmul.f32 -1.442695, %v556_v36  ;;  %v627_v42 = vadd.f32 %v626_v40, %v482_v41 }
 0x1b3   : > { %1185 = vpow2.f32 %v893_v37 }
 0x1b4   : > { %1187 = vtanh.f32 %v627_v42 }
 0x1bd   : > { %v1186_v43 = vpop.eup %1185 }
 0x1be   : > { %v639_v44 = vadd.f32 1.0, %v1186_v43  ;;  %v1188_v45 = vpop.eup %1187 }
 0x1c0   : > { %1189 = vrcp.f32 %v639_v44 }
 0x1c1   : > { %1191 = vpow2.f32 %v892_v57 }
 0x1ca   : > { %v1190_v46 = vpop.eup %1189 }
 0x1cb   : > { %v642_v47 = vmul.f32 0.1, %v1190_v46  ;;  %v1192_v58 = vpop.eup %1191 }
 0x1cc   : > { %v632_v59 = vadd.f32 1.0, %v1192_v58 }
 0x1cd   : > { %v643_v49 = vsub.f32 1.0, %v642_v47  ;;  %v646_v50 = vmul.f32 %v1188_v45, %v642_v47 }
 0x1ce   : > { %1193 = vrcp.f32 %v632_v59 }
 0x1cf   : > { %v644_v51 = vmul.f32 %v643_v49, %v336_v48 }
 0x1d1   : > { %v647_v52 = vadd.f32 %v646_v50, %v644_v51 }
 0x1d3   : > { %952 = vmatmul.mubr.f32.vlgmr.msra.gmra.mrb[2].mxu0 %v647_v52  ;;  %748 = vst [vmem:[%s1684_s30 + $0x8] sm:$0xff] %v647_v52 }
 0x1d8   : > { %v1194_v4 = vpop.eup %1193 }
 0x1d9   : > { %v635_v5 = vmul.f32 0.1, %v1194_v4 }
 0x1db   : > { %v741_v6 = vsub.f32 1.0, %v635_v5 }
 0x1dd   : > { %v742_v8 = vmul.f32 %v741_v6, %v1673_v56 }
 0x2a6   : > { %v737_v63 = vpop.f32.mrb[2].mxu0 }
 0x2a7   : > { %v738_v1 = vadd.f32 %v894_v62, %v737_v63  ;;  %v953_v2 = vpop.f32.mrb[3].mxu0 }
 0x2a9   : > { %v743_v3 = vadd.f32 %v738_v1, %v625_v0 }
 0x2ab   : > { %1195 = vtanh.f32 %v743_v3 }
 0x2b5   : > { %v1196_v7 = vpop.eup %1195 }
 0x2b6   : > { %v745_v9 = vmul.f32 %v1196_v7, %v635_v5 }
 0x2b8   : > { %v746_v10 = vadd.f32 %v745_v9, %v742_v8 }
 0x2ba   : > { %747 = vst [vmem:[%s1684_s30] sm:$0xff] %v746_v10 }
 0x2bb   : > { %1326 = shalt.err (!%p1323_p5)
}
 0x2bc   : > { %s1327_s2 = scalar_lea.hbm %s1696_s15, 256  ;;  %s1331_s27 = scalar_lea.hbm %s1747_s6, 512 }
 0x2bd   : > { %p1328_p1 = scmp.ne.s32.totalorder %s1696_s15, %s1327_s2  ;;  %p1332_p0 = scmp.lt.u32.totalorder %s1696_s15, %s1747_s6 }
 0x2be   : > { %p1333_p9 = scmp.lt.u32.totalorder %s1331_s27, %s1327_s2  ;;  %p1335_p2 = scmp.lt.u32.totalorder %s1327_s2, %s1696_s15 }
 0x2bf   : > { %p1329_p8 = pnand %p1328_p1, %p1770_p13 }
 0x2c0   : > { %p1334_p12 = por %p1333_p9, %p1332_p0 }
 0x2c1   : > { %p1330_p11 = pneg %p1329_p8 }
 0x2c2   : > { %p1336_p6 = por %p1335_p2, %p1334_p12 }
 0x2c4   : > { %p1337_p10 = pnand %p1336_p6, %p1330_p11 }
 0x2c6   : > { %1340 = shalt.err (!%p1337_p10)
}
 0x2c7   : > { %1118 = dma.vmem_to_hbm [thread:$0]  (%p1770_p13), %s1698_s14, 256, %s1696_s15, %s750_s16  }
 0x2c8 PF: > { %s776_s8 = sand.u32 1, %s1379_s21   ;;  %p1771_p4 = scmp.ne.s32.totalorder %s1755_s28, 0 }
 0x2c9   : > { %p1772_p7 = scmp.ge.s32.totalorder %s1391_s24, 2  ;;  %s777_s9 = scalar_lea.sflag [#allocation4], %s776_s8 }
 0x2cb   : > { %p1135_p3 = pnand %p1772_p7, %p1771_p4 }
 0x2cd   : > { %1374 = dma.done.wait (!%p1135_p3), %s777_s9, 256  }
 0x2ce   : > { %1376 = vsyncadd (!%p1135_p3), %s777_s9, 4294967040  ;;  %p23_p5 = scmp.ge.s32.totalorder %s1550_s26, 4   ;;  %s1773_s21 = smov %s1383_s22 }
 0x2cf   : > { %s1774_s22 = smov %s1387_s23  ;;  %s1775_s23 = smov %s1559_s11 }
 0x2d0   : > { %s1776_s24 = smov %s1550_s26  ;;  %25 = sbr.rel (!%p23_p5) target bundleno = 11 (0xb), region = 110 }
 0x2d7   :  { %782 = vsyncpa [#allocation3], 1 }
 0x2d8   :  { %784 = vsyncpa [#allocation3 + $0x1], 1 }
 0x2d9   :  { %785 = vsyncpa [#allocation6], 1 }
 0x2da   :  { %787 = vsyncpa [#allocation6 + $0x1], 1 }
 0x2db   :  { %788 = vsyncpa [#allocation9], 1 }
 0x2dc   :  { %789 = vsyncpa [#allocation4], 1 }
 0x2dd   :  { %791 = vsyncpa [#allocation4 + $0x1], 1 }

</bundles_post_ra>
